<compile_context>
chip_gen: v7x
topology: tpu7x:2x2x1
jax: 0.10.0
libtpu: 0.0.40
codegen_flags: <defaults>
</compile_context>

<pallas_src>
import jax
import jax.numpy as jnp
from jax.experimental import pallas as pl
from jax.experimental.pallas import tpu as pltpu


def _round_up(a, b):
    return (a + b - 1) // b * b


def sum_gauss_kernel(xc_ref, w1_ref, b1_ref, w2_ref, b2_ref, w3_ref, b3_ref,
                     mu_ref, coef_ref, nhiv_ref, out_ref):
    # xc: (c1, T) with batch on the lane axis; row 0 is x, rows 1.. are cond.
    xc = xc_ref[...]
    x_row = xc[0:1, :]                                   # (1, T)

    # --- FCNN: Linear -> Tanh -> Linear -> Tanh -> Linear (transposed layout) ----
    # w1 has a zero column for the x row, so only cond contributes.
    h = jnp.tanh(jnp.dot(w1_ref[...], xc, preferred_element_type=jnp.float32)
                 + b1_ref[...])                          # (hidden, T)
    h = jnp.tanh(jnp.dot(w2_ref[...], h, preferred_element_type=jnp.float32)
                 + b2_ref[...])                          # (hidden, T)
    logits = (jnp.dot(w3_ref[...], h, preferred_element_type=jnp.float32)
              + b3_ref[...])                             # (ngauss, T)

    # --- softmax over the mixture axis, normalization folded into a final divide ---
    m = jnp.max(logits, axis=0, keepdims=True)           # (1, T)
    e = jnp.exp(logits - m)                              # (ngauss, T)
    s_den = jnp.sum(e, axis=0, keepdims=True)            # (1, T)

    # --- mixture of Gaussians (coef = 1/sqrt(2*pi*var), nhiv = -0.5/var) ----------
    diff = x_row - mu_ref[...]                            # (ngauss, T)
    weighted = e * (coef_ref[...] * jnp.exp(nhiv_ref[...] * diff * diff))
    s_num = jnp.sum(weighted, axis=0, keepdims=True)      # (1, T), lane-dense

    li = s_num / s_den                                    # == sum_i pw_i * gauss_i
    out_ref[...] = (-jnp.log(li + 1e-30)).reshape(out_ref.shape)


def sum_gauss_forward(x, cond, params, mu_all, var_all, *, tile_n=8192):
    """x: (N, 1) f32, cond: (N, num_cond) f32. Returns neglogP of shape (N,)."""
    w1, b1, w2, b2, w3, b3 = params
    N = x.shape[0]
    num_cond = cond.shape[1]
    hidden = w1.shape[1]
    ngauss = w3.shape[1]
    c1 = num_cond + 1

    # Transposed packed input: batch on the lane axis. Row 0 = x, rows 1.. = cond.
    packed = jnp.concatenate(
        [x.astype(jnp.float32), cond.astype(jnp.float32)], axis=1).T   # (c1, N)

    # Transposed, VMEM-resident parameters; zero column folds the x row out of w1.
    w1e_t = jnp.concatenate(
        [jnp.zeros((hidden, 1), jnp.float32), w1.astype(jnp.float32).T], axis=1)
    b1_t = b1.astype(jnp.float32).T                      # (hidden, 1)
    w2_t = w2.astype(jnp.float32).T                      # (hidden, hidden)
    b2_t = b2.astype(jnp.float32).T                      # (hidden, 1)
    w3_t = w3.astype(jnp.float32).T                      # (ngauss, hidden)
    b3_t = b3.astype(jnp.float32).T                      # (ngauss, 1)

    mu_t = mu_all.reshape(-1, 1).astype(jnp.float32)     # (ngauss, 1)
    var_t = var_all.reshape(-1, 1).astype(jnp.float32)
    coef_t = 1.0 / jnp.sqrt(2.0 * jnp.pi * var_t)
    nhiv_t = -0.5 / var_t

    # Batch tiling: tile_n multiple of 128 (lane-dense output row), clamped to the
    # padded batch, and capped so there are >= 2 grid blocks when possible (megacore).
    tile_n = max(128, _round_up(tile_n, 128))
    n_pad128 = _round_up(max(N, 1), 128)
    tile_n = min(tile_n, n_pad128)
    if n_pad128 >= 256:
        tile_n = min(tile_n, _round_up(n_pad128 // 2, 128))
    n_pad = _round_up(N, tile_n)
    if n_pad != N:
        packed = jnp.pad(packed, ((0, 0), (0, n_pad - N)))
    num_blocks = n_pad // tile_n

    consts = (w1e_t, b1_t, w2_t, b2_t, w3_t, b3_t, mu_t, coef_t, nhiv_t)
    const_map = lambda i: (0, 0)                         # VMEM-resident across the grid
    const_specs = [pl.BlockSpec(a.shape, const_map) for a in consts]

    flops = 2 * n_pad * (c1 * hidden + hidden * hidden + hidden * ngauss) \
        + 12 * n_pad * ngauss
    transc = n_pad * (2 * hidden + 2 * ngauss + 2)
    bytes_acc = 4 * (n_pad * (c1 + 1) + sum(int(a.size) for a in consts))

    out = pl.pallas_call(
        sum_gauss_kernel,
        out_shape=jax.ShapeDtypeStruct((num_blocks, 1, tile_n), jnp.float32),
        grid=(num_blocks,),
        in_specs=[pl.BlockSpec((c1, tile_n), lambda i: (0, i))] + const_specs,
        out_specs=pl.BlockSpec((1, 1, tile_n), lambda i: (i, 0, 0)),
        compiler_params=pltpu.CompilerParams(
            dimension_semantics=("parallel",)),
        cost_estimate=pl.CostEstimate(
            flops=flops, transcendentals=transc, bytes_accessed=bytes_acc),
    )(packed, *consts)

    return out.reshape(-1)[:N]


def init_params(key, num_cond, hidden_dim, ngauss):
    """Deterministic FCNN parameters. Weights stored as (in, out), biases (1, out)."""
    ks = jax.random.split(key, 6)

    def lin(kw, kb, fan_in, fan_out):
        bound = 1.0 / jnp.sqrt(fan_in)
        w = jax.random.uniform(kw, (fan_in, fan_out), jnp.float32, -bound, bound)
        b = jax.random.uniform(kb, (1, fan_out), jnp.float32, -bound, bound)
        return w, b

    w1, b1 = lin(ks[0], ks[1], num_cond, hidden_dim)
    w2, b2 = lin(ks[2], ks[3], hidden_dim, hidden_dim)
    w3, b3 = lin(ks[4], ks[5], hidden_dim, ngauss)
    return (w1, b1, w2, b2, w3, b3)


def reference_forward(x, cond, params, mu_all, var_all):
    w1, b1, w2, b2, w3, b3 = params
    h = jnp.tanh(cond @ w1 + b1)
    h = jnp.tanh(h @ w2 + b2)
    logits = h @ w3 + b3
    pw = jax.nn.softmax(logits, axis=1)
    mu = mu_all.reshape(1, -1)
    var = var_all.reshape(1, -1)
    coef = 1.0 / jnp.sqrt(2.0 * jnp.pi * var)
    gauss = coef * jnp.exp(-0.5 * (x - mu) ** 2 / var)
    li = jnp.sum(pw * gauss, axis=1)
    return -jnp.log(li + 1e-30)


if __name__ == "__main__":
    N, num_cond, hidden_dim, ngauss = 16, 2, 8, 3

    key = jax.random.PRNGKey(0)
    k_x, k_c, k_p = jax.random.split(key, 3)

    # halo-count-like input in [0, 1); only x[:, 0] is used (dim=1)
    x = jax.random.uniform(k_x, (N, 1), jnp.float32)
    cond = jax.random.normal(k_c, (N, num_cond), jnp.float32)

    params = init_params(k_p, num_cond, hidden_dim, ngauss)
    mu_all = jnp.array([0.1, 0.5, 0.9], dtype=jnp.float32)
    sig_all = jnp.array([0.2, 0.3, 0.4], dtype=jnp.float32)
    var_all = sig_all ** 2

    out = jax.block_until_ready(
        sum_gauss_forward(x, cond, params, mu_all, var_all))
    ref = reference_forward(x, cond, params, mu_all, var_all)
    assert out.shape == (N,)
    assert jnp.allclose(out, ref, atol=1e-3, rtol=1e-3), "mismatch vs JAX reference"

    # Also exercise the multi-tile grid path (>=2 grid steps + padded tail).
    N2 = 300
    k_x2, k_c2 = jax.random.split(k_x, 2)
    x2 = jax.random.uniform(k_x2, (N2, 1), jnp.float32)
    cond2 = jax.random.normal(k_c2, (N2, num_cond), jnp.float32)
    out2 = jax.block_until_ready(
        sum_gauss_forward(x2, cond2, params, mu_all, var_all, tile_n=128))
    ref2 = reference_forward(x2, cond2, params, mu_all, var_all)
    assert out2.shape == (N2,)
    assert jnp.allclose(out2, ref2, atol=1e-3, rtol=1e-3), "mismatch (multi-tile)"

    # Default (large) tile path on the same data.
    out3 = jax.block_until_ready(
        sum_gauss_forward(x2, cond2, params, mu_all, var_all))
    assert jnp.allclose(out3, ref2, atol=1e-3, rtol=1e-3), "mismatch (default tile)"

    print("KERNEL_OK")
</pallas_src>

<mosaic_0001>
module attributes {stable_mosaic.version = 11 : i64} {
  func.func @sum_gauss_kernel(%arg0: i32, %arg1: memref<3x128xf32, #tpu.memory_space<vmem>>, %arg2: memref<8x3xf32, #tpu.memory_space<vmem>>, %arg3: memref<8x1xf32, #tpu.memory_space<vmem>>, %arg4: memref<8x8xf32, #tpu.memory_space<vmem>>, %arg5: memref<8x1xf32, #tpu.memory_space<vmem>>, %arg6: memref<3x8xf32, #tpu.memory_space<vmem>>, %arg7: memref<3x1xf32, #tpu.memory_space<vmem>>, %arg8: memref<3x1xf32, #tpu.memory_space<vmem>>, %arg9: memref<3x1xf32, #tpu.memory_space<vmem>>, %arg10: memref<3x1xf32, #tpu.memory_space<vmem>>, %arg11: memref<1x1x128xf32, #tpu.memory_space<vmem>>) attributes {dimension_semantics = [#tpu.dimension_semantics<parallel>], iteration_bounds = array<i64: 1>, scalar_prefetch = 0 : i64, scratch_operands = 0 : i64, tpu.core_type = #tpu.core_type<tc>, window_params = [{transform_indices = @transform_0, window_bounds = array<i64: 3, 128>}, {pipeline_mode = #tpu.pipeline_mode<synchronous>, transform_indices = @transform_1, window_bounds = array<i64: 8, 3>}, {pipeline_mode = #tpu.pipeline_mode<synchronous>, transform_indices = @transform_2, window_bounds = array<i64: 8, 1>}, {pipeline_mode = #tpu.pipeline_mode<synchronous>, transform_indices = @transform_3, window_bounds = array<i64: 8, 8>}, {pipeline_mode = #tpu.pipeline_mode<synchronous>, transform_indices = @transform_4, window_bounds = array<i64: 8, 1>}, {pipeline_mode = #tpu.pipeline_mode<synchronous>, transform_indices = @transform_5, window_bounds = array<i64: 3, 8>}, {pipeline_mode = #tpu.pipeline_mode<synchronous>, transform_indices = @transform_6, window_bounds = array<i64: 3, 1>}, {pipeline_mode = #tpu.pipeline_mode<synchronous>, transform_indices = @transform_7, window_bounds = array<i64: 3, 1>}, {pipeline_mode = #tpu.pipeline_mode<synchronous>, transform_indices = @transform_8, window_bounds = array<i64: 3, 1>}, {pipeline_mode = #tpu.pipeline_mode<synchronous>, transform_indices = @transform_9, window_bounds = array<i64: 3, 1>}, {transform_indices = @transform_10, window_bounds = array<i64: 1, 1, 128>}]} {
    %c0 = arith.constant 0 : index
    %c0_0 = arith.constant 0 : index
    %0 = vector.load %arg1[%c0, %c0_0] : memref<3x128xf32, #tpu.memory_space<vmem>>, vector<3x128xf32>
    %1 = vector.extract_strided_slice %0 {offsets = [0, 0], sizes = [1, 128], strides = [1, 1]} : vector<3x128xf32> to vector<1x128xf32>
    %c0_1 = arith.constant 0 : index
    %c0_2 = arith.constant 0 : index
    %2 = vector.load %arg2[%c0_1, %c0_2] : memref<8x3xf32, #tpu.memory_space<vmem>>, vector<8x3xf32>
    %cst = arith.constant dense<0.000000e+00> : vector<8x128xf32>
    %3 = tpu.matmul %2, %0, %cst {dimension_numbers = #tpu.dot_dimension_numbers<[1], [0], [0], [1], [0, 0, 1, 1], [], []>} : vector<8x3xf32>, vector<3x128xf32>, vector<8x128xf32> -> vector<8x128xf32>
    %c0_3 = arith.constant 0 : index
    %c0_4 = arith.constant 0 : index
    %4 = vector.load %arg3[%c0_3, %c0_4] : memref<8x1xf32, #tpu.memory_space<vmem>>, vector<8x1xf32>
    %5 = vector.broadcast %4 : vector<8x1xf32> to vector<8x128xf32>
    %6 = arith.addf %3, %5 : vector<8x128xf32>
    %7 = math.tanh %6 : vector<8x128xf32>
    %c0_5 = arith.constant 0 : index
    %c0_6 = arith.constant 0 : index
    %8 = vector.load %arg4[%c0_5, %c0_6] : memref<8x8xf32, #tpu.memory_space<vmem>>, vector<8x8xf32>
    %cst_7 = arith.constant dense<0.000000e+00> : vector<8x128xf32>
    %9 = tpu.matmul %8, %7, %cst_7 {dimension_numbers = #tpu.dot_dimension_numbers<[1], [0], [0], [1], [0, 0, 1, 1], [], []>} : vector<8x8xf32>, vector<8x128xf32>, vector<8x128xf32> -> vector<8x128xf32>
    %c0_8 = arith.constant 0 : index
    %c0_9 = arith.constant 0 : index
    %10 = vector.load %arg5[%c0_8, %c0_9] : memref<8x1xf32, #tpu.memory_space<vmem>>, vector<8x1xf32>
    %11 = vector.broadcast %10 : vector<8x1xf32> to vector<8x128xf32>
    %12 = arith.addf %9, %11 : vector<8x128xf32>
    %13 = math.tanh %12 : vector<8x128xf32>
    %c0_10 = arith.constant 0 : index
    %c0_11 = arith.constant 0 : index
    %14 = vector.load %arg6[%c0_10, %c0_11] : memref<3x8xf32, #tpu.memory_space<vmem>>, vector<3x8xf32>
    %cst_12 = arith.constant dense<0.000000e+00> : vector<3x128xf32>
    %15 = tpu.matmul %14, %13, %cst_12 {dimension_numbers = #tpu.dot_dimension_numbers<[1], [0], [0], [1], [0, 0, 1, 1], [], []>} : vector<3x8xf32>, vector<8x128xf32>, vector<3x128xf32> -> vector<3x128xf32>
    %c0_13 = arith.constant 0 : index
    %c0_14 = arith.constant 0 : index
    %16 = vector.load %arg7[%c0_13, %c0_14] : memref<3x1xf32, #tpu.memory_space<vmem>>, vector<3x1xf32>
    %17 = vector.broadcast %16 : vector<3x1xf32> to vector<3x128xf32>
    %18 = arith.addf %15, %17 : vector<3x128xf32>
    %cst_15 = arith.constant dense<0xFF800000> : vector<128xf32>
    %19 = vector.multi_reduction <maximumf>, %18, %cst_15 [0] : vector<3x128xf32> to vector<128xf32>
    %20 = vector.shape_cast %19 : vector<128xf32> to vector<1x128xf32>
    %21 = vector.broadcast %20 : vector<1x128xf32> to vector<3x128xf32>
    %22 = arith.subf %18, %21 : vector<3x128xf32>
    %23 = math.exp %22 : vector<3x128xf32>
    %cst_16 = arith.constant dense<0.000000e+00> : vector<128xf32>
    %24 = vector.multi_reduction <add>, %23, %cst_16 [0] : vector<3x128xf32> to vector<128xf32>
    %25 = vector.shape_cast %24 : vector<128xf32> to vector<1x128xf32>
    %c0_17 = arith.constant 0 : index
    %c0_18 = arith.constant 0 : index
    %26 = vector.load %arg8[%c0_17, %c0_18] : memref<3x1xf32, #tpu.memory_space<vmem>>, vector<3x1xf32>
    %27 = vector.broadcast %1 : vector<1x128xf32> to vector<3x128xf32>
    %28 = vector.broadcast %26 : vector<3x1xf32> to vector<3x128xf32>
    %29 = arith.subf %27, %28 : vector<3x128xf32>
    %c0_19 = arith.constant 0 : index
    %c0_20 = arith.constant 0 : index
    %30 = vector.load %arg9[%c0_19, %c0_20] : memref<3x1xf32, #tpu.memory_space<vmem>>, vector<3x1xf32>
    %c0_21 = arith.constant 0 : index
    %c0_22 = arith.constant 0 : index
    %31 = vector.load %arg10[%c0_21, %c0_22] : memref<3x1xf32, #tpu.memory_space<vmem>>, vector<3x1xf32>
    %32 = vector.broadcast %31 : vector<3x1xf32> to vector<3x128xf32>
    %33 = arith.mulf %32, %29 : vector<3x128xf32>
    %34 = arith.mulf %33, %29 : vector<3x128xf32>
    %35 = math.exp %34 : vector<3x128xf32>
    %36 = vector.broadcast %30 : vector<3x1xf32> to vector<3x128xf32>
    %37 = arith.mulf %36, %35 : vector<3x128xf32>
    %38 = arith.mulf %23, %37 : vector<3x128xf32>
    %cst_23 = arith.constant dense<0.000000e+00> : vector<128xf32>
    %39 = vector.multi_reduction <add>, %38, %cst_23 [0] : vector<3x128xf32> to vector<128xf32>
    %40 = vector.shape_cast %39 : vector<128xf32> to vector<1x128xf32>
    %41 = arith.divf %40, %25 : vector<1x128xf32>
    %cst_24 = arith.constant 1.000000e-30 : f32
    %42 = vector.broadcast %cst_24 : f32 to vector<1x128xf32>
    %43 = arith.addf %41, %42 : vector<1x128xf32>
    %44 = math.log %43 : vector<1x128xf32>
    %cst_25 = arith.constant 0.000000e+00 : f32
    %45 = vector.broadcast %cst_25 : f32 to vector<1x128xf32>
    %46 = arith.subf %45, %44 : vector<1x128xf32>
    %47 = vector.shape_cast %46 : vector<1x128xf32> to vector<1x1x128xf32>
    %c0_26 = arith.constant 0 : index
    %c0_27 = arith.constant 0 : index
    %c0_28 = arith.constant 0 : index
    %48 = vector.load %arg11[%c0_26, %c0_27, %c0_28] : memref<1x1x128xf32, #tpu.memory_space<vmem>>, vector<1x1x128xf32>
    tpu.vector_store %arg11[%c0_26, %c0_27, %c0_28], %47 {strides = array<i32>} : memref<1x1x128xf32, #tpu.memory_space<vmem>>, vector<1x1x128xf32>,
    return
  }
  func.func @transform_0(%arg0: i32) -> (i32, i32) {
    %c0_i32 = arith.constant 0 : i32
    %c0_i32_0 = arith.constant 0 : i32
    return %c0_i32, %arg0 : i32, i32
  }
  func.func @transform_1(%arg0: i32) -> (i32, i32) {
    %c0_i32 = arith.constant 0 : i32
    %c0_i32_0 = arith.constant 0 : i32
    %c0_i32_1 = arith.constant 0 : i32
    return %c0_i32, %c0_i32_0 : i32, i32
  }
  func.func @transform_2(%arg0: i32) -> (i32, i32) {
    %c0_i32 = arith.constant 0 : i32
    %c0_i32_0 = arith.constant 0 : i32
    %c0_i32_1 = arith.constant 0 : i32
    return %c0_i32, %c0_i32_0 : i32, i32
  }
  func.func @transform_3(%arg0: i32) -> (i32, i32) {
    %c0_i32 = arith.constant 0 : i32
    %c0_i32_0 = arith.constant 0 : i32
    %c0_i32_1 = arith.constant 0 : i32
    return %c0_i32, %c0_i32_0 : i32, i32
  }
  func.func @transform_4(%arg0: i32) -> (i32, i32) {
    %c0_i32 = arith.constant 0 : i32
    %c0_i32_0 = arith.constant 0 : i32
    %c0_i32_1 = arith.constant 0 : i32
    return %c0_i32, %c0_i32_0 : i32, i32
  }
  func.func @transform_5(%arg0: i32) -> (i32, i32) {
    %c0_i32 = arith.constant 0 : i32
    %c0_i32_0 = arith.constant 0 : i32
    %c0_i32_1 = arith.constant 0 : i32
    return %c0_i32, %c0_i32_0 : i32, i32
  }
  func.func @transform_6(%arg0: i32) -> (i32, i32) {
    %c0_i32 = arith.constant 0 : i32
    %c0_i32_0 = arith.constant 0 : i32
    %c0_i32_1 = arith.constant 0 : i32
    return %c0_i32, %c0_i32_0 : i32, i32
  }
  func.func @transform_7(%arg0: i32) -> (i32, i32) {
    %c0_i32 = arith.constant 0 : i32
    %c0_i32_0 = arith.constant 0 : i32
    %c0_i32_1 = arith.constant 0 : i32
    return %c0_i32, %c0_i32_0 : i32, i32
  }
  func.func @transform_8(%arg0: i32) -> (i32, i32) {
    %c0_i32 = arith.constant 0 : i32
    %c0_i32_0 = arith.constant 0 : i32
    %c0_i32_1 = arith.constant 0 : i32
    return %c0_i32, %c0_i32_0 : i32, i32
  }
  func.func @transform_9(%arg0: i32) -> (i32, i32) {
    %c0_i32 = arith.constant 0 : i32
    %c0_i32_0 = arith.constant 0 : i32
    %c0_i32_1 = arith.constant 0 : i32
    return %c0_i32, %c0_i32_0 : i32, i32
  }
  func.func @transform_10(%arg0: i32) -> (i32, i32, i32) {
    %c0_i32 = arith.constant 0 : i32
    %c0_i32_0 = arith.constant 0 : i32
    %c0_i32_1 = arith.constant 0 : i32
    return %arg0, %c0_i32, %c0_i32_0 : i32, i32, i32
  }
}

</mosaic_0001>

<bundles_post_ra>
// kernel: tpu_custom_call.1
= control target key start
LH: loop header
LB: loop body
LE: loop exit
PB: predicated region body
PF: predicated region fallthrough
CT: control target
= control target key end

     0   :  { %vm48_vm0 = vcmask 1042432   ;;  %v426_v2 = vmov 0.0   ;;  %vm427_vm1 = vmmov 0   ;;  %vm44_vm2 = vcmask 23552   ;;  %s534_s0 = inlined_call_operand.vmem [shape: f32[3,128], index: 0, kind: input, shape index: {}]   ;;  %s535_s1 = inlined_call_operand.vmem [shape: f32[8,3], index: 1, kind: input, shape index: {}]   ;;  %s536_s2 = inlined_call_operand.vmem [shape: f32[8,1], index: 2, kind: input, shape index: {}]   ;;  %s537_s3 = inlined_call_operand.vmem [shape: f32[8,8], index: 3, kind: input, shape index: {}]   ;;  %s538_s4 = inlined_call_operand.vmem [shape: f32[8,1], index: 4, kind: input, shape index: {}]   ;;  %s539_s5 = inlined_call_operand.vmem [shape: f32[3,8], index: 5, kind: input, shape index: {}]   ;;  %s540_s6 = inlined_call_operand.vmem [shape: f32[3,1], index: 6, kind: input, shape index: {}]   ;;  %s541_s7 = inlined_call_operand.vmem [shape: f32[3,1], index: 7, kind: input, shape index: {}]   ;;  %s542_s8 = inlined_call_operand.vmem [shape: f32[3,1], index: 8, kind: input, shape index: {}]   ;;  %s543_s9 = inlined_call_operand.vmem [shape: f32[3,1], index: 9, kind: input, shape index: {}]   ;;  %s544_s10 = inlined_call_operand.hbm [shape: f32[1,1,128], index: 10, kind: output, shape index: {}]  }
   0x1   :  { %v36_v0 = vld [vmem:[%s534_s0] sm:$0x7]  ;;  %369 = vmatprep.subr.mxu0 %v426_v2  ;;  %371 = vmatprep.mubr.msk.f32.mxu0 %vm427_vm1, %v426_v2  ;;  %v428_v4 = vmov 0  }
   0x2   :  { %v37_v1 = vld [vmem:[%s535_s1] sm:$0xff]  ;;  %370 = vmatpush3.msk.msra.mxu0 %vm48_vm0, %v36_v0  ;;  %388 = vset.pattern.permute.xlu0 %v428_v4 }
   0x3   :  { %v38_v3 = vld [vmem:[%s536_s2] sm:$0xff]  ;;  %372 = vmatmul.mubr.msk.f32.vlgmr.msra.gmra.mrb[0].mxu0 %vm44_vm2, %v37_v1 }
   0x4   :  { %v206_v5 = vld [vmem:[%s540_s6] sm:$0x7]  ;;  %41 = vperm.xlu0 %388, %v38_v3  }
   0x5   :  { %15 = vsyncpa [#allocation3], 0  ;;  %389 = vset.pattern.permute.xlu1 %v428_v4  ;;  %v124_v6 = vld [vmem:[%s538_s4] sm:$0xff]  ;;  %374 = vmatprep.subr.mxu1 %v426_v2  ;;  %vm130_vm3 = vcmask 64512   ;;  %v303_v22 = vlaneseq }
   0x6   :  { %209 = vperm.xlu1 %389, %v206_v5   ;;  %376 = vmatprep.mubr.msk.f32.mxu1 %vm427_vm1, %v426_v2  ;;  %v302_v7 = vld [vmem:[%s541_s7] sm:$0x7] }
   0x7   :  { %379 = vmatprep.subr.mxu0 %v426_v2  ;;  %381 = vmatprep.mubr.msk.f32.mxu0 %vm427_vm1, %v426_v2  ;;  %v314_v8 = vld [vmem:[%s543_s9] sm:$0x7]  ;;  %v304_v23 = vshrl.u32 %v303_v22, 7 }
   0x8   :  { %127 = vperm.xlu0 %388, %v124_v6   ;;  %v313_v9 = vld [vmem:[%s542_s8] sm:$0x7] }
   0x9   :  { %v123_v14 = vld [vmem:[%s537_s3] sm:$0xff]  ;;  %v305_v25 = vsub.s32 0, %v304_v23  ;;  %s429_s3 = smov [#allocation2]  }
   0xa   :  { %309 = vperm.xlu1 %389, %v302_v7   ;;  %v205_v20 = vld [vmem:[%s539_s5] sm:$0x7]  ;;  %s351_s5 = sshll.u32 %s429_s3, 4  ;;  %s352_s5 = int_to_ptr.vmem [resolvable:$true] %s351_s5 }
   0xb   :  { %v306_v26 = vrot.slane %v36_v0, %v305_v25  ;;  %s402_s25 = scalar_lea.vmem %s352_s5, 16  ;;  %s406_s26 = scalar_lea.vmem %s352_s5, 32 }
   0xc   :  { %317 = vperm.xlu0 %388, %v314_v8   ;;  %p403_p0 = scmp.ne.s32.totalorder %s352_s5, %s402_s25  ;;  %p407_p1 = scmp.lt.s32.totalorder %s352_s5, %s352_s5 }
   0xd   :  { %p408_p2 = scmp.lt.s32.totalorder %s406_s26, %s402_s25 }
   0xe   :  { %326 = vperm.xlu1 %389, %v313_v9  }
   0xf   :  { %p409_p3 = por %p408_p2, %p407_p1 }
  0x11   :  { %p410_p4 = pnand %p409_p3, %p403_p0 }
  0x83   :  { %v42_v10 = vpop.permute.xlu0 %41 }
  0x85   :  { %v210_v24 = vpop.permute.xlu1 %209 }
  0x87   :  { %v128_v16 = vpop.permute.xlu0 %127 }
  0x89   :  { %v310_v27 = vpop.permute.xlu1 %309 }
  0x8a   :  { %v312_v28 = vsub.f32 %v306_v26, %v310_v27 }
  0x8b   :  { %v318_v30 = vpop.permute.xlu0 %317 }
  0x8c   :  { %v320_v34 = vmul.f32 %v318_v30, %v312_v28 }
  0x8d   :  { %v327_v46 = vpop.permute.xlu1 %326 }
  0x8e   :  { %v321_v37 = vmul.f32 %v320_v34, %v312_v28 }
  0x90   :  { %v322_v40 = vmul.f32 1.442695, %v321_v37 }
  0xd6   :  { %v118_v11 = vpop.f32.mrb[0].mxu0 }
  0xd7   :  { %v119_v12 = vadd.f32 %v118_v11, %v42_v10  ;;  %v373_v13 = vpop.f32.mrb[1].mxu0 }
  0xd9   :  { %390 = vtanh.f32 %v119_v12 }
  0xe3   :  { %v391_v15 = vpop.eup %390 }
  0xe4   :  { %375 = vmatpush3.msra.mxu1 %v391_v15 }
  0xe5   :  { %377 = vmatmul.mubr.msk.f32.vlgmr.msra.gmra.mrb[0].mxu1 %vm130_vm3, %v123_v14 }
 0x1b8   :  { %v200_v17 = vpop.f32.mrb[0].mxu1 }
 0x1b9   :  { %v201_v18 = vadd.f32 %v200_v17, %v128_v16  ;;  %v378_v19 = vpop.f32.mrb[1].mxu1 }
 0x1bb   :  { %392 = vtanh.f32 %v201_v18 }
 0x1bc   :  { %394 = vpow2.f32 %v322_v40 }
 0x1c5   :  { %v393_v21 = vpop.eup %392 }
 0x1c6   :  { %380 = vmatpush3.msra.mxu0 %v393_v21  ;;  %v395_v45 = vpop.eup %394 }
 0x1c7   :  { %382 = vmatmul.mubr.msk.f32.vlgmr.msra.gmra.mrb[2].mxu0 %vm130_vm3, %v205_v20  ;;  %v329_v47 = vmul.f32 %v395_v45, %v327_v46 }
 0x29a   :  { %v281_v29 = vpop.f32.mrb[2].mxu0 }
 0x29b   :  { %v282_v31 = vadd.f32 %v281_v29, %v210_v24  ;;  %v383_v32 = vpop.f32.mrb[3].mxu0 }
 0x29d   :  { %v285_v33 = vsel %vm48_vm0, %v282_v31, -inf }
 0x29e   :  { %v286_v35 = vrot.slane %v285_v33, 4 }
 0x2a0   :  { %v287_v36 = vmax.f32 %v285_v33, %v286_v35 }
 0x2a2   :  { %v288_v38 = vrot.slane %v287_v36, 2 }
 0x2a4   :  { %v289_v39 = vmax.f32 %v287_v36, %v288_v38 }
 0x2a6   :  { %v290_v41 = vrot.slane %v289_v39, 1 }
 0x2a8   :  { %v291_v42 = vmax.f32 %v289_v39, %v290_v41 }
 0x2aa   :  { %v292_v43 = vsub.f32 %v282_v31, %v291_v42 }
 0x2ac   :  { %v293_v44 = vmul.f32 1.442695, %v292_v43 }
 0x2ae   :  { %396 = vpow2.f32 %v293_v44 }
 0x2b8   :  { %v397_v48 = vpop.eup %396 }
 0x2b9   :  { %v295_v49 = vsel %vm48_vm0, %v397_v48, 0.0  ;;  %v330_v50 = vmul.f32 %v397_v48, %v329_v47 }
 0x2ba   :  { %v296_v51 = vrot.slane %v295_v49, 4 }
 0x2bb   :  { %v331_v52 = vsel %vm48_vm0, %v330_v50, 0.0 }
 0x2bc   :  { %v297_v53 = vadd.f32 %v296_v51, %v295_v49  ;;  %v332_v54 = vrot.slane %v331_v52, 4 }
 0x2be   :  { %v298_v55 = vrot.slane %v297_v53, 2  ;;  %v333_v56 = vadd.f32 %v332_v54, %v331_v52 }
 0x2c0   :  { %v299_v57 = vadd.f32 %v298_v55, %v297_v53  ;;  %v334_v59 = vrot.slane %v333_v56, 2 }
 0x2c2   :  { %v300_v58 = vrot.slane %v299_v57, 1  ;;  %v335_v61 = vadd.f32 %v334_v59, %v333_v56 }
 0x2c4   :  { %v301_v60 = vadd.f32 %v300_v58, %v299_v57  ;;  %v336_v62 = vrot.slane %v335_v61, 1 }
 0x2c6   :  { %398 = vrcp.f32 %v301_v60  ;;  %v337_v63 = vadd.f32 %v336_v62, %v335_v61 }
 0x2d0   :  { %v399_v0 = vpop.eup %398 }
 0x2d1   :  { %v339_v1 = vmul.f32 %v399_v0, %v337_v63 }
 0x2d3   :  { %v340_v2 = vadd.f32 1e-30, %v339_v1 }
 0x2d5   :  { %400 = vlog2.f32 %v340_v2 }
 0x2df   :  { %v401_v3 = vpop.eup %400 }
 0x2e0   :  { %v342_v4 = vmul.f32 0.6931472, %v401_v3 }
 0x2e2   :  { %v343_v5 = vsub.f32 0.0, %v342_v4 }
 0x2e4   :  { %344 = vst [vmem:[#allocation2] sm:$0x1] %v343_v5 }
 0x2e5   :  { %413 = shalt.err (!%p410_p4)
}
 0x2e6   :  { %s414_s29 = scalar_lea.hbm %s544_s10, 16 }
 0x2e7   :  { %p415_p5 = scmp.ne.s32.totalorder %s544_s10, %s414_s29  ;;  %p418_p6 = scmp.lt.u32.totalorder %s414_s29, %s544_s10 }
 0x2e9   :  { %p420_p7 = pnand %p418_p6, %p415_p5 }
 0x2eb   :  { %423 = shalt.err (!%p420_p7)
}
 0x2ec   :  { %354 = dma.vmem_to_hbm [thread:$0]  %s352_s5, 16, %s544_s10, [#allocation3]  }
 0x2ed   :  { %424 = dma.done.wait [#allocation3], 16  }
 0x2ee   :  { %425 = vsyncadd [#allocation3], 4294967280 }
 0x2ef   :  { %358 = vsyncpa [#allocation3], 1 }

</bundles_post_ra>
